<compile_context>
chip_gen: v6e
topology: v6e:2x2x1
jax: 0.10.0
libtpu: 0.0.40
codegen_flags: <defaults>
</compile_context>

<pallas_src>
import functools

import jax
import jax.numpy as jnp
from jax.experimental import pallas as pl
from jax.experimental.pallas import tpu as pltpu

EPS = 1e-5
N_LAYERS = 5   # Linear+BN+ReLU blocks in the encoder stack


def _round_up(n, m):
    return ((n + m - 1) // m) * m


def _encoder_kernel(x_ref, w03_ref, w4_ref, wh_ref, vec_ref, out_ref):
    """Fused Encoder forward for one independent batch (one grid step).

    x_ref   : (B, KP)        input, features zero-padded to KP (multiple of 16)
    w03_ref : (4, KP, HP)    bf16 weights of layers 0..3 ([in,out], N padded to HP)
    w4_ref  : (KP, H5)       bf16 weight of layer 4
    wh_ref  : (H5, OUT_W)    bf16 fused [W_mu | W_std] head weight (N padded)
    vec_ref : (11, VW) f32   rows 0..7 : (gamma, beta) pairs of layers 0..3
                             rows 8, 9 : gamma, beta of layer 4
                             row 10    : fused head bias [b_mu | b_std]
    out_ref : (B, OUT_W) f32 [mu | softplus(std)]
    """
    B, KP = x_ref.shape
    HP = w03_ref.shape[2]
    H5 = w4_ref.shape[1]
    OUT_W = wh_ref.shape[1]
    ZP = OUT_W // 2
    inv_b = 1.0 / B

    V = vec_ref[...]                                  # tiny f32 table, a few vregs

    def bn_relu(y, g, be):
        # Training-mode BatchNorm1d + ReLU, two-pass (centered) statistics in f32.
        # The preceding Linear bias is omitted upstream (cancels in the mean sub).
        mean = jnp.sum(y, axis=0, keepdims=True) * inv_b
        d = y - mean
        var = jnp.sum(d * d, axis=0, keepdims=True) * inv_b
        scale = g * jax.lax.rsqrt(var + EPS)
        return jnp.maximum(d * scale + be, 0.0)

    h = x_ref[...]                                                        # (B, KP) f32
    for i in range(4):                                                    # layers 0..3
        y = jnp.dot(h.astype(jnp.bfloat16), w03_ref[i],
                    preferred_element_type=jnp.float32)                   # (B, HP) f32
        # Padded output lanes have gamma=beta=0 -> stay exactly 0 after BN+ReLU,
        # so the K-slice below matches the zero-padded weight rows.
        h = bn_relu(y, V[2 * i:2 * i + 1, :HP], V[2 * i + 1:2 * i + 2, :HP])[:, :KP]

    y = jnp.dot(h.astype(jnp.bfloat16), w4_ref[...],
                preferred_element_type=jnp.float32)                       # layer 4
    h = bn_relu(y, V[8:9, :H5], V[9:10, :H5])                             # (B, H5)

    # Fused mu/std heads: one MXU call, one lane-dense store.
    o = jnp.dot(h.astype(jnp.bfloat16), wh_ref[...],
                preferred_element_type=jnp.float32) + V[10:11, :OUT_W]
    lane = jax.lax.broadcasted_iota(jnp.int32, o.shape, 1)
    # Softplus only on the std half (numerically stable via logaddexp).
    out_ref[...] = jnp.where(lane < ZP, o, jnp.logaddexp(o, 0.0))


def _pad2(a, rows, cols):
    a = jnp.asarray(a, jnp.float32)
    return jnp.pad(a, ((0, rows - a.shape[0]), (0, cols - a.shape[1])))


def pack_params(params, weight_dtype=jnp.bfloat16):
    """Pack PyTorch-layout parameters into 4 lane-dense kernel operands.

    Call ONCE and reuse the result; this is deliberately outside the jitted
    per-call path.
    """
    layers = params["layers"]
    z = params["w_mu"].shape[1]
    d_in = layers[0][0].shape[0]
    hidden = layers[0][0].shape[1]
    h5 = layers[4][0].shape[1]                        # 256
    KP = _round_up(max(d_in, hidden), 16)             # contraction width (not 128-padded)
    HP = _round_up(hidden, 128)                       # hidden layers' output lanes
    ZP = _round_up(z, 64)                             # per-head padded z width
    OUT_W = 2 * ZP                                    # fused [mu|std] output width
    VW = max(h5, HP, OUT_W)

    # Layer Linear biases are intentionally NOT packed: with training-mode BN
    # right after each Linear, the bias cancels exactly in the mean subtraction.
    w03 = jnp.stack([_pad2(w, KP, HP) for (w, _b, _g, _be) in layers[:4]])
    w4 = _pad2(layers[4][0], KP, h5)

    wh = jnp.zeros((h5, OUT_W), jnp.float32)
    wh = wh.at[:, :z].set(params["w_mu"]).at[:, ZP:ZP + z].set(params["w_std"])

    vec = jnp.zeros((11, VW), jnp.float32)
    for i in range(4):
        _w, _b, g, be = layers[i]
        vec = vec.at[2 * i, : g.shape[0]].set(g)
        vec = vec.at[2 * i + 1, : be.shape[0]].set(be)
    vec = vec.at[8, :h5].set(layers[4][2]).at[9, :h5].set(layers[4][3])
    vec = vec.at[10, :z].set(params["b_mu"]).at[10, ZP:ZP + z].set(params["b_std"])

    return (w03.astype(weight_dtype), w4.astype(weight_dtype),
            wh.astype(weight_dtype), vec)


def encoder_forward(x_groups, w03, w4, wh, vec, *, z_dim):
    """x_groups: (G, B, d_in) f32, G independent batches (each normalized over
    its own B rows).  Returns (mu, softplus(std)), each (G, B, z_dim)."""
    G, B, d_in = x_groups.shape
    KP = w03.shape[1]
    assert d_in <= KP, "input feature dim exceeds packed contraction width"
    if d_in < KP:
        x_groups = jnp.pad(x_groups, ((0, 0), (0, 0), (0, KP - d_in)))
    OUT_W = wh.shape[1]
    ZP = OUT_W // 2

    out = pl.pallas_call(
        _encoder_kernel,
        out_shape=jax.ShapeDtypeStruct((G, B, OUT_W), jnp.float32),
        grid=(G,),
        in_specs=[
            # One independent batch per grid step (pipelined at default depth).
            pl.BlockSpec((None, B, KP), lambda g: (g, 0, 0)),
            # Weights: constant index maps -> DMA'd once, VMEM-resident.
            pl.BlockSpec(w03.shape, lambda g: (0, 0, 0)),
            pl.BlockSpec(w4.shape, lambda g: (0, 0)),
            pl.BlockSpec(wh.shape, lambda g: (0, 0)),
            pl.BlockSpec(vec.shape, lambda g: (0, 0)),
        ],
        out_specs=pl.BlockSpec((None, B, OUT_W), lambda g: (g, 0, 0)),
        compiler_params=pltpu.CompilerParams(
            dimension_semantics=("parallel",)),      # shards steps on v7x's 2 TCs
    )(x_groups, w03, w4, wh, vec)

    mu = out[..., :z_dim]
    std = out[..., ZP:ZP + z_dim]
    return mu, std


def init_params(key, inp_dim, out_dim, hidden_dim, z_dim):
    """Deterministic synthetic parameter init (shapes follow the PyTorch module)."""
    dims = [inp_dim + out_dim] + [hidden_dim] * 4 + [256]
    keys = jax.random.split(key, 2 * len(dims) + 4)
    layers = []
    ki = 0
    for i in range(N_LAYERS):
        fan_in, fan_out = dims[i], dims[i + 1]
        w = jax.random.normal(keys[ki], (fan_in, fan_out), jnp.float32) * 0.05
        b = jax.random.normal(keys[ki + 1], (fan_out,), jnp.float32) * 0.05
        gamma = jnp.ones((fan_out,), jnp.float32)   # BatchNorm1d default weight
        beta = jnp.zeros((fan_out,), jnp.float32)   # BatchNorm1d default bias
        layers.append((w, b, gamma, beta))
        ki += 2
    w_mu = jax.random.normal(keys[ki], (256, z_dim), jnp.float32) * 0.05
    b_mu = jax.random.normal(keys[ki + 1], (z_dim,), jnp.float32) * 0.05
    w_std = jax.random.normal(keys[ki + 2], (256, z_dim), jnp.float32) * 0.05
    b_std = jax.random.normal(keys[ki + 3], (z_dim,), jnp.float32) * 0.05
    return {
        "layers": layers,
        "w_mu": w_mu, "b_mu": b_mu,
        "w_std": w_std, "b_std": b_std,
    }


def encoder_reference(x, params):
    """Pure-JAX reference of the PyTorch train-mode forward (biases included),
    mirroring the kernel's bf16-at-the-MXU numerics so the comparison isolates
    kernel correctness from the deliberate bf16 quantization."""
    def q(a):
        return a.astype(jnp.bfloat16).astype(jnp.float32)

    h = x
    for (w, b, g, be) in params["layers"]:
        y = q(h) @ q(w) + b
        mean = jnp.mean(y, axis=0, keepdims=True)
        var = jnp.mean((y - mean) ** 2, axis=0, keepdims=True)
        h = jnp.maximum((y - mean) * jax.lax.rsqrt(var + EPS) * g + be, 0.0)
    mu = q(h) @ q(params["w_mu"]) + params["b_mu"]
    s = q(h) @ q(params["w_std"]) + params["b_std"]
    return mu, jnp.logaddexp(s, 0.0)


if __name__ == "__main__":
    # Small shapes consistent with the module's forward; G independent batches.
    G, B, INP_DIM, OUT_DIM, HIDDEN, Z_DIM = 2, 8, 16, 16, 32, 8

    key = jax.random.PRNGKey(0)
    k_x, k_p = jax.random.split(key)
    x = jax.random.normal(k_x, (G, B, INP_DIM + OUT_DIM), jnp.float32)
    params = init_params(k_p, INP_DIM, OUT_DIM, HIDDEN, Z_DIM)

    packed = pack_params(params)                      # packed ONCE, not per call
    fwd = jax.jit(functools.partial(encoder_forward, z_dim=Z_DIM))

    mu, std = fwd(x, *packed)                         # compile + run
    jax.block_until_ready((mu, std))
    mu, std = fwd(x, *packed)                         # steady-state call: no packing graph
    mu, std = jax.block_until_ready((mu, std))

    assert mu.shape == (G, B, Z_DIM) and std.shape == (G, B, Z_DIM)
    assert bool(jnp.all(jnp.isfinite(mu))) and bool(jnp.all(jnp.isfinite(std)))
    assert bool(jnp.all(std > 0.0))                   # softplus output is strictly positive

    # Correctness vs. a pure-JAX reference (per group, training-mode BN).
    ref_mu, ref_std = jax.vmap(lambda xb: encoder_reference(xb, params))(x)
    err = max(float(jnp.max(jnp.abs(mu - ref_mu))),
              float(jnp.max(jnp.abs(std - ref_std))))
    assert err < 2e-2, f"kernel/reference mismatch: max abs err {err}"

    print("KERNEL_OK")
</pallas_src>

<mosaic_0001>
module attributes {stable_mosaic.version = 11 : i64} {
  func.func @_encoder_kernel(%arg0: i32, %arg1: memref<1x8x32xf32, #tpu.memory_space<vmem>>, %arg2: memref<4x32x128xbf16, #tpu.memory_space<vmem>>, %arg3: memref<32x256xbf16, #tpu.memory_space<vmem>>, %arg4: memref<256x128xbf16, #tpu.memory_space<vmem>>, %arg5: memref<11x256xf32, #tpu.memory_space<vmem>>, %arg6: memref<1x8x128xf32, #tpu.memory_space<vmem>>) attributes {dimension_semantics = [#tpu.dimension_semantics<parallel>], iteration_bounds = array<i64: 2>, scalar_prefetch = 0 : i64, scratch_operands = 0 : i64, tpu.core_type = #tpu.core_type<tc>, window_params = [{transform_indices = @transform_0, window_bounds = array<i64: 1, 8, 32>}, {pipeline_mode = #tpu.pipeline_mode<synchronous>, transform_indices = @transform_1, window_bounds = array<i64: 4, 32, 128>}, {pipeline_mode = #tpu.pipeline_mode<synchronous>, transform_indices = @transform_2, window_bounds = array<i64: 32, 256>}, {pipeline_mode = #tpu.pipeline_mode<synchronous>, transform_indices = @transform_3, window_bounds = array<i64: 256, 128>}, {pipeline_mode = #tpu.pipeline_mode<synchronous>, transform_indices = @transform_4, window_bounds = array<i64: 11, 256>}, {transform_indices = @transform_5, window_bounds = array<i64: 1, 8, 128>}]} {
    %c0 = arith.constant 0 : index
    %c0_0 = arith.constant 0 : index
    %0 = vector.load %arg5[%c0, %c0_0] : memref<11x256xf32, #tpu.memory_space<vmem>>, vector<11x256xf32>
    %c0_1 = arith.constant 0 : index
    %c0_2 = arith.constant 0 : index
    %c0_3 = arith.constant 0 : index
    %1 = vector.load %arg1[%c0_1, %c0_2, %c0_3] : memref<1x8x32xf32, #tpu.memory_space<vmem>>, vector<1x8x32xf32>
    %2 = vector.shape_cast %1 : vector<1x8x32xf32> to vector<8x32xf32>
    %3 = arith.truncf %2 : vector<8x32xf32> to vector<8x32xbf16>
    %c0_4 = arith.constant 0 : index
    %c0_5 = arith.constant 0 : index
    %c0_6 = arith.constant 0 : index
    %4 = vector.load %arg2[%c0_4, %c0_5, %c0_6] : memref<4x32x128xbf16, #tpu.memory_space<vmem>>, vector<1x32x128xbf16>
    %5 = vector.shape_cast %4 : vector<1x32x128xbf16> to vector<32x128xbf16>
    %cst = arith.constant dense<0.000000e+00> : vector<8x128xf32>
    %6 = tpu.matmul %3, %5, %cst {dimension_numbers = #tpu.dot_dimension_numbers<[1], [0], [0], [1], [0, 0, 1, 1], [], []>} : vector<8x32xbf16>, vector<32x128xbf16>, vector<8x128xf32> -> vector<8x128xf32>
    %7 = vector.extract_strided_slice %0 {offsets = [0, 0], sizes = [1, 128], strides = [1, 1]} : vector<11x256xf32> to vector<1x128xf32>
    %8 = vector.extract_strided_slice %0 {offsets = [1, 0], sizes = [1, 128], strides = [1, 1]} : vector<11x256xf32> to vector<1x128xf32>
    %cst_7 = arith.constant dense<0.000000e+00> : vector<128xf32>
    %9 = vector.multi_reduction <add>, %6, %cst_7 [0] : vector<8x128xf32> to vector<128xf32>
    %10 = vector.shape_cast %9 : vector<128xf32> to vector<1x128xf32>
    %cst_8 = arith.constant 1.250000e-01 : f32
    %11 = vector.broadcast %cst_8 : f32 to vector<1x128xf32>
    %12 = arith.mulf %10, %11 : vector<1x128xf32>
    %13 = vector.broadcast %12 : vector<1x128xf32> to vector<8x128xf32>
    %14 = arith.subf %6, %13 : vector<8x128xf32>
    %15 = arith.mulf %14, %14 : vector<8x128xf32>
    %cst_9 = arith.constant dense<0.000000e+00> : vector<128xf32>
    %16 = vector.multi_reduction <add>, %15, %cst_9 [0] : vector<8x128xf32> to vector<128xf32>
    %17 = vector.shape_cast %16 : vector<128xf32> to vector<1x128xf32>
    %cst_10 = arith.constant 1.250000e-01 : f32
    %18 = vector.broadcast %cst_10 : f32 to vector<1x128xf32>
    %19 = arith.mulf %17, %18 : vector<1x128xf32>
    %cst_11 = arith.constant 9.99999974E-6 : f32
    %20 = vector.broadcast %cst_11 : f32 to vector<1x128xf32>
    %21 = arith.addf %19, %20 : vector<1x128xf32>
    %22 = math.rsqrt %21 : vector<1x128xf32>
    %23 = arith.mulf %7, %22 : vector<1x128xf32>
    %24 = vector.broadcast %23 : vector<1x128xf32> to vector<8x128xf32>
    %25 = arith.mulf %14, %24 : vector<8x128xf32>
    %26 = vector.broadcast %8 : vector<1x128xf32> to vector<8x128xf32>
    %27 = arith.addf %25, %26 : vector<8x128xf32>
    %cst_12 = arith.constant 0.000000e+00 : f32
    %28 = vector.broadcast %cst_12 : f32 to vector<8x128xf32>
    %29 = arith.maximumf %27, %28 : vector<8x128xf32>
    %30 = vector.extract_strided_slice %29 {offsets = [0, 0], sizes = [8, 32], strides = [1, 1]} : vector<8x128xf32> to vector<8x32xf32>
    %31 = arith.truncf %30 : vector<8x32xf32> to vector<8x32xbf16>
    %c1 = arith.constant 1 : index
    %c0_13 = arith.constant 0 : index
    %c0_14 = arith.constant 0 : index
    %32 = vector.load %arg2[%c1, %c0_13, %c0_14] : memref<4x32x128xbf16, #tpu.memory_space<vmem>>, vector<1x32x128xbf16>
    %33 = vector.shape_cast %32 : vector<1x32x128xbf16> to vector<32x128xbf16>
    %cst_15 = arith.constant dense<0.000000e+00> : vector<8x128xf32>
    %34 = tpu.matmul %31, %33, %cst_15 {dimension_numbers = #tpu.dot_dimension_numbers<[1], [0], [0], [1], [0, 0, 1, 1], [], []>} : vector<8x32xbf16>, vector<32x128xbf16>, vector<8x128xf32> -> vector<8x128xf32>
    %35 = vector.extract_strided_slice %0 {offsets = [2, 0], sizes = [1, 128], strides = [1, 1]} : vector<11x256xf32> to vector<1x128xf32>
    %36 = vector.extract_strided_slice %0 {offsets = [3, 0], sizes = [1, 128], strides = [1, 1]} : vector<11x256xf32> to vector<1x128xf32>
    %cst_16 = arith.constant dense<0.000000e+00> : vector<128xf32>
    %37 = vector.multi_reduction <add>, %34, %cst_16 [0] : vector<8x128xf32> to vector<128xf32>
    %38 = vector.shape_cast %37 : vector<128xf32> to vector<1x128xf32>
    %cst_17 = arith.constant 1.250000e-01 : f32
    %39 = vector.broadcast %cst_17 : f32 to vector<1x128xf32>
    %40 = arith.mulf %38, %39 : vector<1x128xf32>
    %41 = vector.broadcast %40 : vector<1x128xf32> to vector<8x128xf32>
    %42 = arith.subf %34, %41 : vector<8x128xf32>
    %43 = arith.mulf %42, %42 : vector<8x128xf32>
    %cst_18 = arith.constant dense<0.000000e+00> : vector<128xf32>
    %44 = vector.multi_reduction <add>, %43, %cst_18 [0] : vector<8x128xf32> to vector<128xf32>
    %45 = vector.shape_cast %44 : vector<128xf32> to vector<1x128xf32>
    %cst_19 = arith.constant 1.250000e-01 : f32
    %46 = vector.broadcast %cst_19 : f32 to vector<1x128xf32>
    %47 = arith.mulf %45, %46 : vector<1x128xf32>
    %cst_20 = arith.constant 9.99999974E-6 : f32
    %48 = vector.broadcast %cst_20 : f32 to vector<1x128xf32>
    %49 = arith.addf %47, %48 : vector<1x128xf32>
    %50 = math.rsqrt %49 : vector<1x128xf32>
    %51 = arith.mulf %35, %50 : vector<1x128xf32>
    %52 = vector.broadcast %51 : vector<1x128xf32> to vector<8x128xf32>
    %53 = arith.mulf %42, %52 : vector<8x128xf32>
    %54 = vector.broadcast %36 : vector<1x128xf32> to vector<8x128xf32>
    %55 = arith.addf %53, %54 : vector<8x128xf32>
    %cst_21 = arith.constant 0.000000e+00 : f32
    %56 = vector.broadcast %cst_21 : f32 to vector<8x128xf32>
    %57 = arith.maximumf %55, %56 : vector<8x128xf32>
    %58 = vector.extract_strided_slice %57 {offsets = [0, 0], sizes = [8, 32], strides = [1, 1]} : vector<8x128xf32> to vector<8x32xf32>
    %59 = arith.truncf %58 : vector<8x32xf32> to vector<8x32xbf16>
    %c2 = arith.constant 2 : index
    %c0_22 = arith.constant 0 : index
    %c0_23 = arith.constant 0 : index
    %60 = vector.load %arg2[%c2, %c0_22, %c0_23] : memref<4x32x128xbf16, #tpu.memory_space<vmem>>, vector<1x32x128xbf16>
    %61 = vector.shape_cast %60 : vector<1x32x128xbf16> to vector<32x128xbf16>
    %cst_24 = arith.constant dense<0.000000e+00> : vector<8x128xf32>
    %62 = tpu.matmul %59, %61, %cst_24 {dimension_numbers = #tpu.dot_dimension_numbers<[1], [0], [0], [1], [0, 0, 1, 1], [], []>} : vector<8x32xbf16>, vector<32x128xbf16>, vector<8x128xf32> -> vector<8x128xf32>
    %63 = vector.extract_strided_slice %0 {offsets = [4, 0], sizes = [1, 128], strides = [1, 1]} : vector<11x256xf32> to vector<1x128xf32>
    %64 = vector.extract_strided_slice %0 {offsets = [5, 0], sizes = [1, 128], strides = [1, 1]} : vector<11x256xf32> to vector<1x128xf32>
    %cst_25 = arith.constant dense<0.000000e+00> : vector<128xf32>
    %65 = vector.multi_reduction <add>, %62, %cst_25 [0] : vector<8x128xf32> to vector<128xf32>
    %66 = vector.shape_cast %65 : vector<128xf32> to vector<1x128xf32>
    %cst_26 = arith.constant 1.250000e-01 : f32
    %67 = vector.broadcast %cst_26 : f32 to vector<1x128xf32>
    %68 = arith.mulf %66, %67 : vector<1x128xf32>
    %69 = vector.broadcast %68 : vector<1x128xf32> to vector<8x128xf32>
    %70 = arith.subf %62, %69 : vector<8x128xf32>
    %71 = arith.mulf %70, %70 : vector<8x128xf32>
    %cst_27 = arith.constant dense<0.000000e+00> : vector<128xf32>
    %72 = vector.multi_reduction <add>, %71, %cst_27 [0] : vector<8x128xf32> to vector<128xf32>
    %73 = vector.shape_cast %72 : vector<128xf32> to vector<1x128xf32>
    %cst_28 = arith.constant 1.250000e-01 : f32
    %74 = vector.broadcast %cst_28 : f32 to vector<1x128xf32>
    %75 = arith.mulf %73, %74 : vector<1x128xf32>
    %cst_29 = arith.constant 9.99999974E-6 : f32
    %76 = vector.broadcast %cst_29 : f32 to vector<1x128xf32>
    %77 = arith.addf %75, %76 : vector<1x128xf32>
    %78 = math.rsqrt %77 : vector<1x128xf32>
    %79 = arith.mulf %63, %78 : vector<1x128xf32>
    %80 = vector.broadcast %79 : vector<1x128xf32> to vector<8x128xf32>
    %81 = arith.mulf %70, %80 : vector<8x128xf32>
    %82 = vector.broadcast %64 : vector<1x128xf32> to vector<8x128xf32>
    %83 = arith.addf %81, %82 : vector<8x128xf32>
    %cst_30 = arith.constant 0.000000e+00 : f32
    %84 = vector.broadcast %cst_30 : f32 to vector<8x128xf32>
    %85 = arith.maximumf %83, %84 : vector<8x128xf32>
    %86 = vector.extract_strided_slice %85 {offsets = [0, 0], sizes = [8, 32], strides = [1, 1]} : vector<8x128xf32> to vector<8x32xf32>
    %87 = arith.truncf %86 : vector<8x32xf32> to vector<8x32xbf16>
    %c3 = arith.constant 3 : index
    %c0_31 = arith.constant 0 : index
    %c0_32 = arith.constant 0 : index
    %88 = vector.load %arg2[%c3, %c0_31, %c0_32] : memref<4x32x128xbf16, #tpu.memory_space<vmem>>, vector<1x32x128xbf16>
    %89 = vector.shape_cast %88 : vector<1x32x128xbf16> to vector<32x128xbf16>
    %cst_33 = arith.constant dense<0.000000e+00> : vector<8x128xf32>
    %90 = tpu.matmul %87, %89, %cst_33 {dimension_numbers = #tpu.dot_dimension_numbers<[1], [0], [0], [1], [0, 0, 1, 1], [], []>} : vector<8x32xbf16>, vector<32x128xbf16>, vector<8x128xf32> -> vector<8x128xf32>
    %91 = vector.extract_strided_slice %0 {offsets = [6, 0], sizes = [1, 128], strides = [1, 1]} : vector<11x256xf32> to vector<1x128xf32>
    %92 = vector.extract_strided_slice %0 {offsets = [7, 0], sizes = [1, 128], strides = [1, 1]} : vector<11x256xf32> to vector<1x128xf32>
    %cst_34 = arith.constant dense<0.000000e+00> : vector<128xf32>
    %93 = vector.multi_reduction <add>, %90, %cst_34 [0] : vector<8x128xf32> to vector<128xf32>
    %94 = vector.shape_cast %93 : vector<128xf32> to vector<1x128xf32>
    %cst_35 = arith.constant 1.250000e-01 : f32
    %95 = vector.broadcast %cst_35 : f32 to vector<1x128xf32>
    %96 = arith.mulf %94, %95 : vector<1x128xf32>
    %97 = vector.broadcast %96 : vector<1x128xf32> to vector<8x128xf32>
    %98 = arith.subf %90, %97 : vector<8x128xf32>
    %99 = arith.mulf %98, %98 : vector<8x128xf32>
    %cst_36 = arith.constant dense<0.000000e+00> : vector<128xf32>
    %100 = vector.multi_reduction <add>, %99, %cst_36 [0] : vector<8x128xf32> to vector<128xf32>
    %101 = vector.shape_cast %100 : vector<128xf32> to vector<1x128xf32>
    %cst_37 = arith.constant 1.250000e-01 : f32
    %102 = vector.broadcast %cst_37 : f32 to vector<1x128xf32>
    %103 = arith.mulf %101, %102 : vector<1x128xf32>
    %cst_38 = arith.constant 9.99999974E-6 : f32
    %104 = vector.broadcast %cst_38 : f32 to vector<1x128xf32>
    %105 = arith.addf %103, %104 : vector<1x128xf32>
    %106 = math.rsqrt %105 : vector<1x128xf32>
    %107 = arith.mulf %91, %106 : vector<1x128xf32>
    %108 = vector.broadcast %107 : vector<1x128xf32> to vector<8x128xf32>
    %109 = arith.mulf %98, %108 : vector<8x128xf32>
    %110 = vector.broadcast %92 : vector<1x128xf32> to vector<8x128xf32>
    %111 = arith.addf %109, %110 : vector<8x128xf32>
    %cst_39 = arith.constant 0.000000e+00 : f32
    %112 = vector.broadcast %cst_39 : f32 to vector<8x128xf32>
    %113 = arith.maximumf %111, %112 : vector<8x128xf32>
    %114 = vector.extract_strided_slice %113 {offsets = [0, 0], sizes = [8, 32], strides = [1, 1]} : vector<8x128xf32> to vector<8x32xf32>
    %115 = arith.truncf %114 : vector<8x32xf32> to vector<8x32xbf16>
    %c0_40 = arith.constant 0 : index
    %c0_41 = arith.constant 0 : index
    %116 = vector.load %arg3[%c0_40, %c0_41] : memref<32x256xbf16, #tpu.memory_space<vmem>>, vector<32x256xbf16>
    %cst_42 = arith.constant dense<0.000000e+00> : vector<8x256xf32>
    %117 = tpu.matmul %115, %116, %cst_42 {dimension_numbers = #tpu.dot_dimension_numbers<[1], [0], [0], [1], [0, 0, 1, 1], [], []>} : vector<8x32xbf16>, vector<32x256xbf16>, vector<8x256xf32> -> vector<8x256xf32>
    %118 = vector.extract_strided_slice %0 {offsets = [8, 0], sizes = [1, 256], strides = [1, 1]} : vector<11x256xf32> to vector<1x256xf32>
    %119 = vector.extract_strided_slice %0 {offsets = [9, 0], sizes = [1, 256], strides = [1, 1]} : vector<11x256xf32> to vector<1x256xf32>
    %cst_43 = arith.constant dense<0.000000e+00> : vector<256xf32>
    %120 = vector.multi_reduction <add>, %117, %cst_43 [0] : vector<8x256xf32> to vector<256xf32>
    %121 = vector.shape_cast %120 : vector<256xf32> to vector<1x256xf32>
    %cst_44 = arith.constant 1.250000e-01 : f32
    %122 = vector.broadcast %cst_44 : f32 to vector<1x256xf32>
    %123 = arith.mulf %121, %122 : vector<1x256xf32>
    %124 = vector.broadcast %123 : vector<1x256xf32> to vector<8x256xf32>
    %125 = arith.subf %117, %124 : vector<8x256xf32>
    %126 = arith.mulf %125, %125 : vector<8x256xf32>
    %cst_45 = arith.constant dense<0.000000e+00> : vector<256xf32>
    %127 = vector.multi_reduction <add>, %126, %cst_45 [0] : vector<8x256xf32> to vector<256xf32>
    %128 = vector.shape_cast %127 : vector<256xf32> to vector<1x256xf32>
    %cst_46 = arith.constant 1.250000e-01 : f32
    %129 = vector.broadcast %cst_46 : f32 to vector<1x256xf32>
    %130 = arith.mulf %128, %129 : vector<1x256xf32>
    %cst_47 = arith.constant 9.99999974E-6 : f32
    %131 = vector.broadcast %cst_47 : f32 to vector<1x256xf32>
    %132 = arith.addf %130, %131 : vector<1x256xf32>
    %133 = math.rsqrt %132 : vector<1x256xf32>
    %134 = arith.mulf %118, %133 : vector<1x256xf32>
    %135 = vector.broadcast %134 : vector<1x256xf32> to vector<8x256xf32>
    %136 = arith.mulf %125, %135 : vector<8x256xf32>
    %137 = vector.broadcast %119 : vector<1x256xf32> to vector<8x256xf32>
    %138 = arith.addf %136, %137 : vector<8x256xf32>
    %cst_48 = arith.constant 0.000000e+00 : f32
    %139 = vector.broadcast %cst_48 : f32 to vector<8x256xf32>
    %140 = arith.maximumf %138, %139 : vector<8x256xf32>
    %141 = arith.truncf %140 : vector<8x256xf32> to vector<8x256xbf16>
    %c0_49 = arith.constant 0 : index
    %c0_50 = arith.constant 0 : index
    %142 = vector.load %arg4[%c0_49, %c0_50] : memref<256x128xbf16, #tpu.memory_space<vmem>>, vector<256x128xbf16>
    %cst_51 = arith.constant dense<0.000000e+00> : vector<8x128xf32>
    %143 = tpu.matmul %141, %142, %cst_51 {dimension_numbers = #tpu.dot_dimension_numbers<[1], [0], [0], [1], [0, 0, 1, 1], [], []>} : vector<8x256xbf16>, vector<256x128xbf16>, vector<8x128xf32> -> vector<8x128xf32>
    %144 = vector.extract_strided_slice %0 {offsets = [10, 0], sizes = [1, 128], strides = [1, 1]} : vector<11x256xf32> to vector<1x128xf32>
    %145 = vector.broadcast %144 : vector<1x128xf32> to vector<8x128xf32>
    %146 = arith.addf %143, %145 : vector<8x128xf32>
    %147 = tpu.iota {dimensions = array<i32: 1>} : vector<8x128xi32>
    %c64_i32 = arith.constant 64 : i32
    %148 = vector.broadcast %c64_i32 : i32 to vector<8x128xi32>
    %149 = arith.cmpi slt, %147, %148 : vector<8x128xi32>
    %cst_52 = arith.constant 0.000000e+00 : f32
    %150 = vector.broadcast %cst_52 : f32 to vector<8x128xf32>
    %151 = arith.maximumf %146, %150 : vector<8x128xf32>
    %152 = vector.broadcast %cst_52 : f32 to vector<8x128xf32>
    %153 = arith.subf %146, %152 : vector<8x128xf32>
    %154 = arith.cmpf one, %153, %153 : vector<8x128xf32>
    %155 = vector.broadcast %cst_52 : f32 to vector<8x128xf32>
    %156 = arith.addf %146, %155 : vector<8x128xf32>
    %157 = math.absf %153 : vector<8x128xf32>
    %cst_53 = arith.constant 0.000000e+00 : f32
    %158 = vector.broadcast %cst_53 : f32 to vector<8x128xf32>
    %159 = arith.subf %158, %157 : vector<8x128xf32>
    %160 = math.exp %159 : vector<8x128xf32>
    %161 = math.log1p %160 : vector<8x128xf32>
    %162 = arith.addf %151, %161 : vector<8x128xf32>
    %163 = arith.select %154, %156, %162 : vector<8x128xi1>, vector<8x128xf32>
    %164 = arith.select %149, %146, %163 : vector<8x128xi1>, vector<8x128xf32>
    %c0_54 = arith.constant 0 : index
    %c0_55 = arith.constant 0 : index
    %c0_56 = arith.constant 0 : index
    %165 = vector.load %arg6[%c0_54, %c0_55, %c0_56] : memref<1x8x128xf32, #tpu.memory_space<vmem>>, vector<1x8x128xf32>
    %166 = vector.shape_cast %165 : vector<1x8x128xf32> to vector<8x128xf32>
    %167 = vector.shape_cast %164 : vector<8x128xf32> to vector<1x8x128xf32>
    tpu.vector_store %arg6[%c0_54, %c0_55, %c0_56], %167 {strides = array<i32>} : memref<1x8x128xf32, #tpu.memory_space<vmem>>, vector<1x8x128xf32>,
    return
  }
  func.func @transform_0(%arg0: i32) -> (i32, i32, i32) {
    %c0_i32 = arith.constant 0 : i32
    %c0_i32_0 = arith.constant 0 : i32
    %c0_i32_1 = arith.constant 0 : i32
    return %arg0, %c0_i32, %c0_i32_0 : i32, i32, i32
  }
  func.func @transform_1(%arg0: i32) -> (i32, i32, i32) {
    %c0_i32 = arith.constant 0 : i32
    %c0_i32_0 = arith.constant 0 : i32
    %c0_i32_1 = arith.constant 0 : i32
    %c0_i32_2 = arith.constant 0 : i32
    return %c0_i32, %c0_i32_0, %c0_i32_1 : i32, i32, i32
  }
  func.func @transform_2(%arg0: i32) -> (i32, i32) {
    %c0_i32 = arith.constant 0 : i32
    %c0_i32_0 = arith.constant 0 : i32
    %c0_i32_1 = arith.constant 0 : i32
    return %c0_i32, %c0_i32_0 : i32, i32
  }
  func.func @transform_3(%arg0: i32) -> (i32, i32) {
    %c0_i32 = arith.constant 0 : i32
    %c0_i32_0 = arith.constant 0 : i32
    %c0_i32_1 = arith.constant 0 : i32
    return %c0_i32, %c0_i32_0 : i32, i32
  }
  func.func @transform_4(%arg0: i32) -> (i32, i32) {
    %c0_i32 = arith.constant 0 : i32
    %c0_i32_0 = arith.constant 0 : i32
    %c0_i32_1 = arith.constant 0 : i32
    return %c0_i32, %c0_i32_0 : i32, i32
  }
  func.func @transform_5(%arg0: i32) -> (i32, i32, i32) {
    %c0_i32 = arith.constant 0 : i32
    %c0_i32_0 = arith.constant 0 : i32
    %c0_i32_1 = arith.constant 0 : i32
    return %arg0, %c0_i32, %c0_i32_0 : i32, i32, i32
  }
}

</mosaic_0001>

<bundles_post_ra>
// kernel: encoder_forward.1
= control target key start
LH: loop header
LB: loop body
LE: loop exit
PB: predicated region body
PF: predicated region fallthrough
CT: control target
= control target key end

     0   :  { %10 = vsyncpa [#allocation3], 0  ;;  %s1790_s0 = inlined_call_operand.hbm [shape: f32[2,8,32], index: 0, kind: input, shape index: {}]   ;;  %s1791_s1 = inlined_call_operand.hbm [shape: bf16[4,32,128], index: 1, kind: input, shape index: {}]   ;;  %s1792_s2 = inlined_call_operand.hbm [shape: bf16[32,256], index: 2, kind: input, shape index: {}]   ;;  %s1793_s3 = inlined_call_operand.hbm [shape: bf16[256,128], index: 3, kind: input, shape index: {}]   ;;  %s1794_s4 = inlined_call_operand.hbm [shape: f32[11,256], index: 4, kind: input, shape index: {}]   ;;  %s1795_s5 = inlined_call_operand.vmem [shape: f32[2,8,128], index: 5, kind: output, shape index: {}]  }
   0x1   :  { %12 = vsyncpa [#allocation3 + $0x1], 0 }
   0x2   :  { %13 = vsyncpa [#allocation5], 0 }
   0x3   :  { %14 = vsyncpa [#allocation8], 0  ;;  %s1568_s18 = smov 0   ;;  %s1570_s19 = smov 0  }
   0x4   :  { %s1572_s20 = smov 0   ;;  %s1574_s21 = smov 0  }
   0x5 LB: > { %s1524_s22 = smov [#allocation4]   ;;  %s1589_s24 = sadd.s32 4294967295, %s1522_s21   ;;  %s1522_s21 = sphi %s1574_s21, %s1812_s21   ;;  %s1518_s20 = sphi %s1572_s20, %s1811_s20   ;;  %s1514_s19 = sphi %s1570_s19, %s1810_s19   ;;  %s1510_s18 = sphi %s1568_s18, %s1809_s18  }
   0x6   : > { %s173_s23 = sshll.u32 %s1524_s22, 4  ;;  %p1097_p0 = scmp.ge.s32.totalorder %s1522_s21, 1  ;;  %s174_s23 = int_to_ptr.vmem [resolvable:$true] %s173_s23 }
   0x7   : > { %p1796_p1 = scmp.eq.s32.totalorder %s1589_s24, 0  ;;  %p161_p2 = scmp.lt.s32.totalorder %s1522_s21, 3 }
   0x8   : > { %s1525_s26 = smov [#allocation7]   ;;  %s1526_s29 = smov [#allocation6]  }
   0x9   : > { %p1594_p3 = pnand %p1097_p0, %p161_p2  ;;  %s199_s27 = sshll.u32 %s1525_s26, 4  ;;  %s1606_s27 = int_to_ptr.vmem [resolvable:$true] %s199_s27 }
   0xa   : > { %s186_s30 = sshll.u32 %s1526_s29, 4  ;;  %s1359_s6 = scalar_lea.vmem %s174_s23, 1024  ;;  %s1608_s30 = int_to_ptr.vmem [resolvable:$true] %s186_s30 }
   0xb   : > { %s1799_s25 = scalar_select %p1594_p3, 1, 0 }
   0xc   : > { %p1231_p4 = pneg %p1594_p3  ;;  %p1360_p7 = scmp.ne.s32.totalorder %s174_s23, %s1359_s6 }
   0xd   : > { %p1367_p10 = scmp.lt.s32.totalorder %s174_s23, %s174_s23  ;;  %p1368_p11 = scmp.lt.s32.totalorder %s1359_s6, %s1359_s6 }
   0xe   : > { %p1602_p5 = pnand %p1231_p4, %p1796_p1 }
   0xf   : > { %p1369_p12 = por %p1368_p11, %p1367_p10 }
  0x10   : > { %p1350_p6 = pneg %p1602_p5 }
  0x12   : > { %p1362_p8 = pnand %p1360_p7, %p1350_p6 }
  0x14   : > { %p1363_p9 = pneg %p1362_p8 }
  0x16   : > { %p1370_p13 = pnand %p1369_p12, %p1363_p9 }
  0x18   : > { %1373 = shalt.err (!%p1370_p13)
}
  0x19   : > { %s1527_s7 = smov 64   ;;  %s1528_s8 = smov 4  }
  0x1a   : > { %1234 = dma.hbm_to_vmem [thread:$0]  (!%p1602_p5), %s1791_s1, 1024, %s174_s23, [#allocation5], %s1527_s7, %s1527_s7, %s1528_s8  }
  0x1b   : > { %s1385_s11 = scalar_lea.vmem %s1606_s27, 2048  ;;  %p1393_p7 = scmp.lt.s32.totalorder %s1606_s27, %s1606_s27 }
  0x1c   : > { %p1386_p0 = scmp.ne.s32.totalorder %s1606_s27, %s1385_s11  ;;  %p1394_p8 = scmp.lt.s32.totalorder %s1385_s11, %s1385_s11 }
  0x1e   : > { %p1388_p2 = pnand %p1386_p0, %p1350_p6  ;;  %p1395_p9 = por %p1394_p8, %p1393_p7 }
  0x20   : > { %p1389_p4 = pneg %p1388_p2 }
  0x22   : > { %p1396_p10 = pnand %p1395_p9, %p1389_p4 }
  0x24   : > { %1399 = shalt.err (!%p1396_p10)
}
  0x25   : > { %1240 = dma.hbm_to_vmem [thread:$0]  (!%p1602_p5), %s1793_s3, 2048, %s1606_s27, [#allocation8], %s1527_s7, %s1527_s7, %s1528_s8  }
  0x26   : > { %s1411_s14 = scalar_lea.vmem %s1608_s30, 512  ;;  %p1419_p0 = scmp.lt.s32.totalorder %s1608_s30, %s1608_s30 }
  0x27   : > { %p1412_p11 = scmp.ne.s32.totalorder %s1608_s30, %s1411_s14  ;;  %p1420_p2 = scmp.lt.s32.totalorder %s1411_s14, %s1411_s14 }
  0x29   : > { %p1414_p12 = pnand %p1412_p11, %p1350_p6  ;;  %p1421_p4 = por %p1420_p2, %p1419_p0 }
  0x2b   : > { %p1415_p13 = pneg %p1414_p12 }
  0x2d   : > { %p1422_p7 = pnand %p1421_p4, %p1415_p13 }
  0x2f   : > { %1425 = shalt.err (!%p1422_p7)
}
  0x30   : > { %s1529_s15 = smov 128   ;;  %s1530_s16 = smov 8  }
  0x31   : > { %1237 = dma.hbm_to_vmem [thread:$0]  (!%p1602_p5), %s1792_s2, 512, %s1608_s30, [#allocation5], %s1529_s15, %s1529_s15, %s1530_s16  }
  0x32   : > { %s1531_s23 = smov [#allocation9]  }
  0x33   : > { %s212_s26 = sshll.u32 %s1531_s23, 4  ;;  %s213_s26 = int_to_ptr.vmem [resolvable:$true] %s212_s26 }
  0x34   : > { %s1437_s27 = scalar_lea.vmem %s213_s26, 512  ;;  %p1445_p11 = scmp.lt.s32.totalorder %s213_s26, %s213_s26 }
  0x35   : > { %p1438_p8 = scmp.ne.s32.totalorder %s213_s26, %s1437_s27  ;;  %p1446_p12 = scmp.lt.s32.totalorder %s1437_s27, %s1437_s27 }
  0x37   : > { %p1440_p9 = pnand %p1438_p8, %p1350_p6  ;;  %p1447_p13 = por %p1446_p12, %p1445_p11 }
  0x39   : > { %p1441_p10 = pneg %p1440_p9 }
  0x3b   : > { %p1448_p0 = pnand %p1447_p13, %p1441_p10 }
  0x3d   : > { %1451 = shalt.err (!%p1448_p0)
}
  0x3e   : > { %s1532_s29 = smov 256   ;;  %s1533_s30 = smov 16  }
  0x3f   : > { %1243 = dma.hbm_to_vmem [thread:$0]  (!%p1602_p5), %s1794_s4, 512, %s213_s26, [#allocation8], %s1532_s29, %s1532_s29, %s1533_s30  }
  0x40   : > { %s1655_s8 = sadd.s32 1, %s1522_s21   ;;  %s27_s9 = sadd.s32 1, %s1518_s20 }
  0x41   : > { %s24_s10 = ssub.s32 %s1522_s21, %s1655_s8  ;;  %p34_p6 = scmp.ne.s32.totalorder %s1518_s20, %s1514_s19 }
  0x42   : > { %p25_p2 = scmp.eq.s32.totalorder %s24_s10, 0  ;;  %p35_p4 = scmp.eq.s32.totalorder %s1522_s21, 0 }
  0x43   : > { %p40_p7 = scmp.ne.s32.totalorder %s1514_s19, %s1510_s18  ;;  %p1252_p8 = scmp.lt.s32.totalorder %s1522_s21, 2 }
  0x44   : > { %s1667_s11 = scalar_select %p25_p2, %s1518_s20, %s27_s9  }
  0x45   : > { %p36_p9 = por %p35_p4, %p34_p6  ;;  %p1671_p10 = por %p1796_p1, %p40_p7 }
  0x46   : > { %s226_s12 = sand.u32 1, %s1518_s20   ;;  %s1104_s13 = sshll.u32 %s1522_s21, 7 }
  0x47   : > { %s1801_s28 = scalar_select %p1671_p10, 1, 0 }
  0x48   : > { %s1103_s14 = sshll.u32 %s226_s12, 3  ;;  %s1680_s17 = scalar_lea.hbm %s1790_s0, %s1104_s13 }
  0x49   : > { %s230_s18 = scalar_lea.vmem [#allocation2], %s1103_s14  ;;  %p1682_p5 = pnand %p1252_p8, %p36_p9 }
  0x4a   : > { %s237_s22 = sshll.u32 %s230_s18, 4  ;;  %s227_s26 = scalar_lea.sflag [#allocation3], %s226_s12  ;;  %s238_s22 = int_to_ptr.vmem [resolvable:$true] %s237_s22 }
  0x4b   : > { %s1452_s27 = scalar_lea.hbm %s1680_s17, 128  ;;  %p1454_p12 = pneg %p1682_p5 }
  0x4c   : > { %p1453_p11 = scmp.ne.s32.totalorder %s1680_s17, %s1452_s27  ;;  %s1457_s30 = scalar_lea.hbm %s1790_s0, 256 }
  0x4d   : > { %p1458_p6 = scmp.lt.s32.totalorder %s1680_s17, %s1790_s0  ;;  %p1459_p2 = scmp.lt.s32.totalorder %s1457_s30, %s1452_s27 }
  0x4e   : > { %p1455_p13 = pnand %p1454_p12, %p1453_p11 }
  0x4f   : > { %p1460_p4 = por %p1459_p2, %p1458_p6 }
  0x50   : > { %p1456_p0 = pneg %p1455_p13 }
  0x52   : > { %p1461_p7 = pnand %p1460_p4, %p1456_p0 }
  0x54   : > { %1464 = shalt.err (!%p1461_p7)
}
  0x55   : > { %s1465_s9 = scalar_lea.vmem %s238_s22, 128  ;;  %s1534_s10 = smov [#allocation2]  }
  0x56   : > { %p1466_p8 = scmp.ne.s32.totalorder %s238_s22, %s1465_s9  ;;  %s1470_s12 = sshll.u32 %s1534_s10, 4  ;;  %s1471_s12 = int_to_ptr.vmem [resolvable:$false] %s1470_s12 }
  0x57   : > { %s1472_s13 = scalar_lea.vmem %s1471_s12, 256  ;;  %p1473_p11 = scmp.lt.s32.totalorder %s238_s22, %s1471_s12 }
  0x58   : > { %p1468_p9 = pnand %p1466_p8, %p1454_p12  ;;  %p1474_p13 = scmp.lt.s32.totalorder %s1472_s13, %s1465_s9 }
  0x5a   : > { %p1469_p1 = pneg %p1468_p9  ;;  %p1475_p10 = por %p1474_p13, %p1473_p11 }
  0x5c   : > { %p1476_p3 = pnand %p1475_p10, %p1469_p1 }
  0x5e   : > { %1479 = shalt.err (!%p1476_p3)
}
  0x5f   : > { %1247 = dma.hbm_to_vmem [thread:$0]  (!%p1682_p5), %s1680_s17, 128, %s238_s22, %s227_s26  }
  0x60   : > { %p1803_p0 = scmp.ne.s32.totalorder %s1799_s25, 0 }
  0x61   : > { %s248_s14 = sand.u32 (!%p1803_p0), 1, %s1514_s19   ;;  %p1804_p12 = scmp.ne.s32.totalorder (!%p1803_p0), %s1801_s28, 0 }
  0x62   : > { %246 = sbr.rel (%p1803_p0) target bundleno = 1631 (0x65f), region = 40  ;;  %s1106_s15 = sshll.u32 (!%p1803_p0), %s248_s14, 3 }
  0x63   : > { %s249_s16 = scalar_lea.sflag (!%p1803_p0), [#allocation3], %s248_s14  ;;  %s252_s18 = scalar_lea.vmem (!%p1803_p0), [#allocation2], %s1106_s15 }
  0x67   : > { %1497 = dma.done.wait (%p1804_p12), %s249_s16, 128  }
  0x68   : > { %1499 = vsyncadd (%p1804_p12), %s249_s16, 4294967168  ;;  %p1805_p1 = scmp.eq.s32.totalorder %s1589_s24, 0 }
  0x6a   : > { %1501 = dma.done.wait (%p1805_p1), [#allocation5], 1536   ;;  %p1806_p3 = pmov %p1805_p1 }
  0x6b   : > { %p1807_p10 = pmov %p1805_p1 }
  0x6c   : > { %1503 = vsyncadd (%p1806_p3), [#allocation5], 4294965760 }
  0x6d   : > { %1505 = dma.done.wait (%p1807_p10), [#allocation8], 2560   ;;  %p1808_p5 = pmov %p1805_p1 }
  0x6e   : > { %v1535_v0 = vmov 0.0   ;;  %vm1536_vm0 = vmmov 0   ;;  %v1302_v1 = vld [vmem:[#allocation4 + $0x8] sm:$0xff]   ;;  %v1303_v2 = vld [vmem:[#allocation4] sm:$0xff]   ;;  %v302_v3 = vld [vmem:[%s252_s18] sm:$0xff]  ;;  %vm320_vm1 = vcmask 261120   ;;  %v383_v28 = vlaneseq }
  0x6f   : > { %1507 = vsyncadd (%p1808_p5), [#allocation8], 4294964736  ;;  %1181 = vmatprep.subr.bf16.mxu0 %v1535_v0  ;;  %1185 = vmatprep.mubr.msk.bf16.mxu0 %vm1536_vm0, %v1535_v0  ;;  %v303_v4 = vpack.c.bf16 %v302_v3, %v302_v3  ;;  %v1304_v5 = vld [vmem:[#allocation4 + $0x18] sm:$0xff]   ;;  %v1305_v6 = vld [vmem:[#allocation4 + $0x10] sm:$0xff]   ;;  %p294_p6 = scmp.lt.s32.totalorder %s1589_s24, 1 }
  0x70   : > { %1205 = vmatprep.subr.bf16.mxu1 %v1535_v0  ;;  %1209 = vmatprep.mubr.msk.bf16.mxu1 %vm1536_vm0, %v1535_v0  ;;  %v1729_v29 = vshrl.u32 %v383_v28, 7  ;;  %v1731_v30 = vld [vmem:[#allocation9] sm:$0xff]  ;;  %v1306_v41 = vld [vmem:[#allocation4 + $0x28] sm:$0xff]  }
  0x71   : > { %1182 = vmatpush3.bf16.msra.mxu0 %v1302_v1  ;;  %v1307_v42 = vld [vmem:[#allocation4 + $0x20] sm:$0xff]   ;;  %s1814_s24 = smov (!%p294_p6, %s1589_s24), 1 }
  0x72   : > { %1183 = vmatprep.subr.bf16.mxu0 %v1535_v0  ;;  %v1734_v31 = vsub.s32 0, %v1729_v29  ;;  %v1737_v32 = vsub.s32 1, %v1729_v29  ;;  %v476_v1 = vsub.s32 2, %v1729_v29  ;;  %s1111_s25 = sshll.u32 %s1814_s24, 3 }
  0x73   : > { %s297_s22 = scalar_lea.vmem %s1795_s5, %s1111_s25 }
  0x74   : > { %v391_v36 = vrot.slane %v1731_v30, %v1737_v32 }
  0x75   : > { %1184 = vmatpush3.bf16.msra.mxu0 %v1303_v2  ;;  %v481_v2 = vsub.s32 3, %v1729_v29 }
  0x76   : > { %1189 = vmatprep.subr.bf16.mxu0 %v1535_v0 }
  0x78   : > { %1186 = vmatmul.mubr.msk.bf16.vlgmr.msra.gmra.mxu0 %vm320_vm1, %v303_v4 }
  0x79   : > { %1193 = vmatprep.mubr.msk.bf16.mxu0 %vm1536_vm0, %v1535_v0  ;;  %1190 = vmatpush3.bf16.msra.mxu0 %v1304_v5 }
  0x7a   : > { %1191 = vmatprep.subr.bf16.mxu0 %v1535_v0 }
  0x7d   : > { %1192 = vmatpush3.bf16.msra.mxu0 %v1305_v6  ;;  %v482_v6 = vrot.slane %v1731_v30, %v481_v2 }
  0x7e   : > { %1197 = vmatprep.subr.bf16.mxu0 %v1535_v0 }
 0x138   : > { %v358_v7 = vpop.f32.mrf.mxu0 }
 0x139   : > { %v364_v8 = vrot.slane %v358_v7, 4 }
 0x13a   : > { %v1187_v9 = vpop.f32.mrf.mxu0 }
 0x13b   : > { %v365_v10 = vadd.f32 %v364_v8, %v358_v7 }
 0x13c   : > { %v361_v11 = vpop.f32.mrf.mxu0 }
 0x13d   : > { %v366_v12 = vrot.slane %v365_v10, 2  ;;  %v1308_v11 = vld [vmem:[#allocation4 + $0x38] sm:$0xff]  }
 0x13e   : > { %v1188_v13 = vpop.f32.mrf.mxu0  ;;  %1206 = vmatpush3.bf16.msra.mxu1 %v1308_v11 }
 0x13f   : > { %v367_v14 = vadd.f32 %v366_v12, %v365_v10  ;;  %1207 = vmatprep.subr.bf16.mxu1 %v1535_v0  ;;  %v1309_v12 = vld [vmem:[#allocation4 + $0x30] sm:$0xff]  }
 0x141   : > { %v368_v15 = vrot.slane %v367_v14, 1 }
 0x142   : > { %1208 = vmatpush3.bf16.msra.mxu1 %v1309_v12  ;;  %v658_v12 = vsub.s32 6, %v1729_v29 }
 0x143   : > { %v369_v16 = vadd.f32 %v368_v15, %v367_v14 }
 0x145   : > { %v370_v17 = vmul.f32 0.125, %v369_v16 }
 0x147   : > { %v371_v18 = vsub.f32 %v358_v7, %v370_v17 }
 0x149   : > { %v372_v19 = vmul.f32 %v371_v18, %v371_v18 }
 0x14b   : > { %v373_v20 = vrot.slane %v372_v19, 4 }
 0x14d   : > { %v374_v21 = vadd.f32 %v373_v20, %v372_v19 }
 0x14f   : > { %v375_v22 = vrot.slane %v374_v21, 2 }
 0x151   : > { %v376_v23 = vadd.f32 %v375_v22, %v374_v21 }
 0x153   : > { %v377_v24 = vrot.slane %v376_v23, 1 }
 0x155   : > { %v378_v25 = vadd.f32 %v377_v24, %v376_v23 }
 0x157   : > { %v379_v26 = vmul.f32 0.125, %v378_v25 }
 0x159   : > { %v380_v27 = vadd.f32 1e-05, %v379_v26 }
 0x15b   : > { %1332 = vrsqrt.f32 %v380_v27 }
 0x168   : > { %v1333_v33 = vpop.eup %1332 }
 0x169   : > { %v382_v34 = vmul.f32 %v1333_v33, %v1731_v30 }
 0x16b   : > { %v386_v35 = vrot.slane %v382_v34, %v1734_v31 }
 0x16d   : > { %v387_v37 = vmul.f32 %v386_v35, %v371_v18 }
 0x16f   : > { %v392_v38 = vadd.f32 %v391_v36, %v387_v37 }
 0x171   : > { %v393_v39 = vmax.f32 %v392_v38, 0.0  ;;  %v567_v38 = vsub.s32 4, %v1729_v29 }
 0x173   : > { %v394_v40 = vpack.c.bf16 %v393_v39, %v393_v39  ;;  %v572_v39 = vsub.s32 5, %v1729_v29 }
 0x175   : > { %1194 = vmatmul.mubr.msk.bf16.vlgmr.msra.gmra.mxu0 %vm320_vm1, %v394_v40 }
 0x176   : > { %1201 = vmatprep.mubr.msk.bf16.mxu0 %vm1536_vm0, %v1535_v0  ;;  %1198 = vmatpush3.bf16.msra.mxu0 %v1306_v41 }
 0x177   : > { %1199 = vmatprep.subr.bf16.mxu0 %v1535_v0 }
 0x17a   : > { %1200 = vmatpush3.bf16.msra.mxu0 %v1307_v42 }
 0x235   : > { %v449_v43 = vpop.f32.mrf.mxu0 }
 0x236   : > { %v455_v44 = vrot.slane %v449_v43, 4 }
 0x237   : > { %v1195_v45 = vpop.f32.mrf.mxu0 }
 0x238   : > { %v456_v46 = vadd.f32 %v455_v44, %v449_v43 }
 0x239   : > { %v452_v47 = vpop.f32.mrf.mxu0 }
 0x23a   : > { %v457_v48 = vrot.slane %v456_v46, 2 }
 0x23b   : > { %v1196_v49 = vpop.f32.mrf.mxu0 }
 0x23c   : > { %v458_v50 = vadd.f32 %v457_v48, %v456_v46  ;;  %v1312_v48 = vld [vmem:[#allocation6 + $0x14] ss:$8 sps:$4 sm:$0xff]   ;;  %v1310_v49 = vld [vmem:[#allocation6 + $0x10] ss:$8 sps:$4 sm:$0xff]  }
 0x23d   : > { %707 = vmatprep.subr.bf16.mxu0 %v1312_v48 }
 0x23e   : > { %v459_v51 = vrot.slane %v458_v50, 1 }
 0x240   : > { %v460_v52 = vadd.f32 %v459_v51, %v458_v50  ;;  %v1315_v50 = vld [vmem:[#allocation6 + $0x4] ss:$8 sps:$4 sm:$0xff]   ;;  %v1313_v51 = vld [vmem:[#allocation6] ss:$8 sps:$4 sm:$0xff]  }
 0x242   : > { %v461_v53 = vmul.f32 0.125, %v460_v52  ;;  %v1537_v52 = vmov 0  }
 0x244   : > { %v462_v54 = vsub.f32 %v449_v43, %v461_v53  ;;  %v573_v43 = vrot.slane %v1731_v30, %v572_v39  ;;  %v1330_v39 = vld [vmem:[#allocation7 + $0x40] sm:$0xff]  }
 0x246   : > { %v463_v55 = vmul.f32 %v462_v54, %v462_v54 }
 0x248   : > { %v464_v56 = vrot.slane %v463_v55, 4 }
 0x24a   : > { %v465_v57 = vadd.f32 %v464_v56, %v463_v55 }
 0x24c   : > { %v466_v58 = vrot.slane %v465_v57, 2 }
 0x24e   : > { %v467_v59 = vadd.f32 %v466_v58, %v465_v57 }
 0x250   : > { %v468_v60 = vrot.slane %v467_v59, 1 }
 0x252   : > { %v469_v61 = vadd.f32 %v468_v60, %v467_v59 }
 0x254   : > { %v470_v62 = vmul.f32 0.125, %v469_v61 }
 0x256   : > { %v471_v63 = vadd.f32 1e-05, %v470_v62 }
 0x258   : > { %1334 = vrsqrt.f32 %v471_v63 }
 0x265   : > { %v1335_v3 = vpop.eup %1334 }
 0x266   : > { %v473_v4 = vmul.f32 %v1335_v3, %v1731_v30 }
 0x268   : > { %v477_v5 = vrot.slane %v473_v4, %v476_v1 }
 0x26a   : > { %v478_v7 = vmul.f32 %v477_v5, %v462_v54 }
 0x26c   : > { %v483_v8 = vadd.f32 %v482_v6, %v478_v7 }
 0x26e   : > { %v484_v9 = vmax.f32 %v483_v8, 0.0 }
 0x270   : > { %v485_v10 = vpack.c.bf16 %v484_v9, %v484_v9 }
 0x272   : > { %1202 = vmatmul.mubr.msk.bf16.vlgmr.msra.gmra.mxu0 %vm320_vm1, %v485_v10 }
 0x273   : > { %708 = vmatpush1.bf16.msra.mxu0 %v1310_v49  ;;  %727 = vmatprep.mubr.bf16.mxu0 %v1537_v52 }
 0x274   : > { %709 = vmatprep.subr.bf16.mxu0 %v1315_v50 }
 0x277   : > { %710 = vmatpush1.bf16.msra.mxu0 %v1313_v51 }
 0x332   : > { %v540_v13 = vpop.f32.mrf.mxu0 }
 0x333   : > { %v546_v14 = vrot.slane %v540_v13, 4 }
 0x334   : > { %v1203_v15 = vpop.f32.mrf.mxu0 }
 0x335   : > { %v547_v16 = vadd.f32 %v546_v14, %v540_v13 }
 0x336   : > { %v543_v17 = vpop.f32.mrf.mxu0 }
 0x337   : > { %v548_v18 = vrot.slane %v547_v16, 2 }
 0x338   : > { %v1204_v19 = vpop.f32.mrf.mxu0 }
 0x339   : > { %v549_v20 = vadd.f32 %v548_v18, %v547_v16 }
 0x33b   : > { %v550_v21 = vrot.slane %v549_v20, 1 }
 0x33d   : > { %v551_v22 = vadd.f32 %v550_v21, %v549_v20 }
 0x33f   : > { %v552_v23 = vmul.f32 0.125, %v551_v22  ;;  %v1316_v22 = vld [vmem:[#allocation7 + $0x78] sm:$0xff]  }
 0x340   : > { %1159 = vmatprep.subr.bf16.mxu1 %v1316_v22 }
 0x341   : > { %v553_v24 = vsub.f32 %v540_v13, %v552_v23  ;;  %v663_v13 = vsub.s32 7, %v1729_v29  ;;  %v1317_v23 = vld [vmem:[#allocation7 + $0x38] sm:$0xff]  }
 0x343   : > { %v554_v25 = vmul.f32 %v553_v24, %v553_v24  ;;  %v664_v17 = vrot.slane %v1731_v30, %v663_v13 }
 0x345   : > { %v555_v26 = vrot.slane %v554_v25, 4 }
 0x347   : > { %v556_v27 = vadd.f32 %v555_v26, %v554_v25  ;;  %v1319_v25 = vld [vmem:[#allocation7 + $0x30] sm:$0xff]   ;;  %v1320_v26 = vld [vmem:[#allocation7 + $0x68] sm:$0xff]  }
 0x349   : > { %v557_v33 = vrot.slane %v556_v27, 2 }
 0x34b   : > { %v558_v34 = vadd.f32 %v557_v33, %v556_v27  ;;  %v1321_v27 = vld [vmem:[#allocation7 + $0x28] sm:$0xff]   ;;  %v1322_v33 = vld [vmem:[#allocation7 + $0x60] sm:$0xff]  }
 0x34d   : > { %v559_v0 = vrot.slane %v558_v34, 1 }
 0x34f   : > { %v560_v35 = vadd.f32 %v559_v0, %v558_v34  ;;  %v1324_v34 = vld [vmem:[#allocation7 + $0x58] sm:$0xff]  }
 0x350   : > { %v1325_v0 = vld [vmem:[#allocation7 + $0x18] sm:$0xff]  }
 0x351   : > { %v561_v36 = vmul.f32 0.125, %v560_v35  ;;  %v1326_v35 = vld [vmem:[#allocation7 + $0x50] sm:$0xff]  }
 0x353   : > { %v562_v37 = vadd.f32 1e-05, %v561_v36  ;;  %v1327_v36 = vld [vmem:[#allocation7 + $0x10] sm:$0xff]  }
 0x355   : > { %1336 = vrsqrt.f32 %v562_v37  ;;  %v1328_v37 = vld [vmem:[#allocation7 + $0x48] sm:$0xff]  }
 0x362   : > { %v1337_v40 = vpop.eup %1336 }
 0x363   : > { %v564_v41 = vmul.f32 %v1337_v40, %v1731_v30  ;;  %v1331_v40 = vld [vmem:[#allocation7] sm:$0xff]  }
 0x365   : > { %v568_v42 = vrot.slane %v564_v41, %v567_v38  ;;  %v1329_v38 = vld [vmem:[#allocation7 + $0x8] sm:$0xff]  }
 0x367   : > { %v569_v44 = vmul.f32 %v568_v42, %v553_v24  ;;  %v1318_v24 = vld [vmem:[#allocation7 + $0x70] sm:$0xff]  }
 0x369   : > { %v574_v45 = vadd.f32 %v573_v43, %v569_v44 }
 0x36b   : > { %v575_v46 = vmax.f32 %v574_v45, 0.0 }
 0x36d   : > { %v576_v47 = vpack.c.bf16 %v575_v46, %v575_v46 }
 0x36f   : > { %1210 = vmatmul.mubr.msk.bf16.vlgmr.msra.gmra.mxu1 %vm320_vm1, %v576_v47 }
 0x370   : > { %1160 = vmatpush3.bf16.msra.mxu1 %v1317_v23 }
 0x371   : > { %1161 = vmatprep.subr.bf16.mxu1 %v1318_v24 }
 0x374   : > { %1162 = vmatpush3.bf16.msra.mxu1 %v1319_v25 }
 0x375   : > { %1163 = vmatprep.subr.bf16.mxu1 %v1320_v26 }
 0x378   : > { %1164 = vmatpush3.bf16.msra.mxu1 %v1321_v27 }
 0x379   : > { %1165 = vmatprep.subr.bf16.mxu1 %v1322_v33 }
 0x42f   : > { %v631_v53 = vpop.f32.mrf.mxu1 }
 0x430   : > { %v637_v54 = vrot.slane %v631_v53, 4 }
 0x431   : > { %v1211_v55 = vpop.f32.mrf.mxu1 }
 0x432   : > { %v638_v56 = vadd.f32 %v637_v54, %v631_v53 }
 0x433   : > { %v634_v57 = vpop.f32.mrf.mxu1 }
 0x434   : > { %v639_v58 = vrot.slane %v638_v56, 2 }
 0x435   : > { %v1212_v59 = vpop.f32.mrf.mxu1 }
 0x436   : > { %v640_v60 = vadd.f32 %v639_v58, %v638_v56 }
 0x438   : > { %v641_v61 = vrot.slane %v640_v60, 1 }
 0x43a   : > { %v642_v62 = vadd.f32 %v641_v61, %v640_v60 }
 0x43c   : > { %v643_v63 = vmul.f32 0.125, %v642_v62 }
 0x43e   : > { %v644_v2 = vsub.f32 %v631_v53, %v643_v63 }
 0x440   : > { %v645_v3 = vmul.f32 %v644_v2, %v644_v2 }
 0x442   : > { %v646_v4 = vrot.slane %v645_v3, 4 }
 0x444   : > { %v647_v5 = vadd.f32 %v646_v4, %v645_v3 }
 0x446   : > { %v648_v6 = vrot.slane %v647_v5, 2 }
 0x448   : > { %v649_v7 = vadd.f32 %v648_v6, %v647_v5 }
 0x44a   : > { %v650_v8 = vrot.slane %v649_v7, 1 }
 0x44c   : > { %v651_v9 = vadd.f32 %v650_v8, %v649_v7 }
 0x44e   : > { %v652_v10 = vmul.f32 0.125, %v651_v9 }
 0x450   : > { %v653_v11 = vadd.f32 1e-05, %v652_v10 }
 0x452   : > { %1338 = vrsqrt.f32 %v653_v11 }
 0x45f   : > { %v1339_v14 = vpop.eup %1338 }
 0x460   : > { %v655_v15 = vmul.f32 %v1339_v14, %v1731_v30  ;;  %v1323_v30 = vld [vmem:[#allocation7 + $0x20] sm:$0xff]  }
 0x461   : > { %1166 = vmatpush3.bf16.msra.mxu1 %v1323_v30 }
 0x462   : > { %v659_v16 = vrot.slane %v655_v15, %v658_v12  ;;  %1167 = vmatprep.subr.bf16.mxu1 %v1324_v34 }
 0x464   : > { %v660_v18 = vmul.f32 %v659_v16, %v644_v2 }
 0x465   : > { %1168 = vmatpush3.bf16.msra.mxu1 %v1325_v0 }
 0x466   : > { %v665_v19 = vadd.f32 %v664_v17, %v660_v18  ;;  %1169 = vmatprep.subr.bf16.mxu1 %v1326_v35  ;;  %v300_v17 = vld [vmem:[#allocation9 + $0x10] sm:$0x7] }
 0x467   : > { %v787_v23 = vrot.slane %v300_v17, %v1737_v32 }
 0x468   : > { %v666_v20 = vmax.f32 %v665_v19, 0.0  ;;  %v301_v19 = vld [vmem:[#allocation9 + $0x18] sm:$0x7] }
 0x469   : > { %1170 = vmatpush3.bf16.msra.mxu1 %v1327_v36  ;;  %v791_v27 = vrot.slane %v301_v19, %v1737_v32 }
 0x46a   : > { %v667_v21 = vpack.c.bf16 %v666_v20, %v666_v20  ;;  %1171 = vmatprep.subr.bf16.mxu1 %v1328_v37 }
 0x46c   : > { %1128 = vmatmul.mubr.msk.bf16.vlgmr.msra.gmra.mxu0 %vm320_vm1, %v667_v21 }
 0x46d   : > { %1172 = vmatpush3.bf16.msra.mxu1 %v1329_v38 }
 0x46e   : > { %1173 = vmatprep.subr.bf16.mxu1 %v1330_v39  ;;  %v833_v39 = vrot.slane %v300_v17, %v476_v1  ;;  %v971_v1 = vand.u32 127, %v383_v28 }
 0x470   : > { %vm972_vm3 = vcmp.lt.s32.totalorder %v971_v1, 64 }
 0x471   : > { %1174 = vmatpush3.bf16.msra.mxu1 %v1331_v40 }
 0x52c   : > { %v729_v41 = vpop.f32.mrf.mxu0 }
 0x52d   : > { %v736_v42 = vrot.slane %v729_v41, 4 }
 0x52e   : > { %v731_v43 = vpop.f32.mrf.mxu0 }
 0x52f   : > { %v737_v44 = vadd.f32 %v736_v42, %v729_v41  ;;  %v742_v45 = vrot.slane %v731_v43, 4 }
 0x530   : > { %v733_v46 = vpop.f32.mrf.mxu0 }
 0x531   : > { %v738_v47 = vrot.slane %v737_v44, 2  ;;  %v743_v48 = vadd.f32 %v742_v45, %v731_v43 }
 0x532   : > { %v734_v49 = vpop.f32.mrf.mxu0 }
 0x533   : > { %v739_v50 = vadd.f32 %v738_v47, %v737_v44  ;;  %v744_v51 = vrot.slane %v743_v48, 2 }
 0x535   : > { %v740_v52 = vrot.slane %v739_v50, 1  ;;  %v745_v53 = vadd.f32 %v744_v51, %v743_v48 }
 0x537   : > { %v741_v54 = vadd.f32 %v740_v52, %v739_v50  ;;  %v746_v55 = vrot.slane %v745_v53, 1 }
 0x539   : > { %v748_v56 = vmul.f32 0.125, %v741_v54  ;;  %v747_v57 = vadd.f32 %v746_v55, %v745_v53 }
 0x53b   : > { %v750_v58 = vsub.f32 %v729_v41, %v748_v56  ;;  %v749_v59 = vmul.f32 0.125, %v747_v57 }
 0x53d   : > { %v752_v60 = vmul.f32 %v750_v58, %v750_v58  ;;  %v751_v61 = vsub.f32 %v731_v43, %v749_v59 }
 0x53f   : > { %v754_v62 = vrot.slane %v752_v60, 4  ;;  %v753_v63 = vmul.f32 %v751_v61, %v751_v61 }
 0x541   : > { %v755_v2 = vadd.f32 %v754_v62, %v752_v60  ;;  %v760_v3 = vrot.slane %v753_v63, 4 }
 0x543   : > { %v756_v4 = vrot.slane %v755_v2, 2  ;;  %v761_v5 = vadd.f32 %v760_v3, %v753_v63 }
 0x545   : > { %v757_v6 = vadd.f32 %v756_v4, %v755_v2  ;;  %v762_v7 = vrot.slane %v761_v5, 2 }
 0x547   : > { %v758_v8 = vrot.slane %v757_v6, 1  ;;  %v763_v9 = vadd.f32 %v762_v7, %v761_v5 }
 0x549   : > { %v759_v10 = vadd.f32 %v758_v8, %v757_v6  ;;  %v764_v11 = vrot.slane %v763_v9, 1 }
 0x54b   : > { %v766_v12 = vmul.f32 0.125, %v759_v10  ;;  %v765_v13 = vadd.f32 %v764_v11, %v763_v9 }
 0x54d   : > { %v768_v14 = vadd.f32 1e-05, %v766_v12  ;;  %v767_v15 = vmul.f32 0.125, %v765_v13 }
 0x54f   : > { %1340 = vrsqrt.f32 %v768_v14  ;;  %v769_v16 = vadd.f32 1e-05, %v767_v15 }
 0x551   : > { %1342 = vrsqrt.f32 %v769_v16 }
 0x55c   : > { %v1341_v18 = vpop.eup %1340 }
 0x55d   : > { %v772_v20 = vmul.f32 %v1341_v18, %v300_v17 }
 0x55e   : > { %v1343_v21 = vpop.eup %1342 }
 0x55f   : > { %v777_v22 = vrot.slane %v772_v20, %v1734_v31  ;;  %v773_v24 = vmul.f32 %v1343_v21, %v301_v19 }
 0x561   : > { %v782_v25 = vmul.f32 %v777_v22, %v750_v58  ;;  %v781_v26 = vrot.slane %v773_v24, %v1734_v31 }
 0x563   : > { %v792_v33 = vadd.f32 %v787_v23, %v782_v25  ;;  %v783_v30 = vmul.f32 %v781_v26, %v751_v61 }
 0x565   : > { %v793_v34 = vadd.f32 %v791_v27, %v783_v30  ;;  %v794_v0 = vmax.f32 %v792_v33, 0.0 }
 0x567   : > { %v795_v35 = vmax.f32 %v793_v34, 0.0  ;;  %v796_v37 = vpack.c.bf16 %v794_v0, %v794_v0 }
 0x569   : > { %v797_v36 = vpack.c.bf16 %v795_v35, %v795_v35 }
 0x56b   : > { %962 = vmatprep.mubr.bf16.mxu1 %v797_v36 }
 0x56c   : > { %963 = vmatmul.mubr.bf16.vlgmr.msra.gmra.mxu1 %v796_v37 }
 0x62c   : > { %v1175_v38 = vpop.f32.mrf.mxu1 }
 0x62e   : > { %v1176_v40 = vpop.f32.mrf.mxu1 }
 0x62f   : > { %v1177_v41 = vadd.f32 %v1176_v40, %v1175_v38 }
 0x630   : > { %v1178_v31 = vpop.f32.mrf.mxu1 }
 0x631   : > { %v965_v42 = vadd.f32 %v1177_v41, %v833_v39 }
 0x632   : > { %v1179_v32 = vpop.f32.mrf.mxu1 }
 0x633   : > { %v976_v43 = vand.u32 2147483647, %v965_v42  ;;  %v973_v53 = vmax.f32 %v965_v42, 0.0  ;;  %vm974_vm4 = vcmp.ne.f32.partialorder %v965_v42, %v965_v42 }
 0x635   : > { %v977_v44 = vsub.f32 0.0, %v976_v43 }
 0x637   : > { %v978_v45 = vmul.f32 1.442695, %v977_v44 }
 0x639   : > { %1344 = vpow2.f32 %v978_v45 }
 0x646   : > { %v1345_v46 = vpop.eup %1344 }
 0x647   : > { %v980_v47 = vadd.f32 1.0, %v1345_v46  ;;  %v983_v48 = vmul.f32 -0.5, %v1345_v46  ;;  %v986_v50 = vand.u32 2147483647, %v1345_v46 }
 0x649   : > { %1346 = vlog2.f32 %v980_v47  ;;  %v984_v49 = vadd.f32 1.0, %v983_v48  ;;  %vm987_vm2 = vcmp.lt.f32.partialorder %v986_v50, 0.0004427343 }
 0x64b   : > { %v985_v52 = vmul.f32 %v1345_v46, %v984_v49 }
 0x656   : > { %v1347_v29 = vpop.eup %1346 }
 0x657   : > { %v982_v51 = vmul.f32 0.6931472, %v1347_v29 }
 0x659   : > { %v988_v54 = vsel %vm987_vm2, %v985_v52, %v982_v51 }
 0x65a   : > { %v989_v55 = vadd.f32 %v988_v54, %v973_v53 }
 0x65c   : > { %v990_v56 = vsel %vm974_vm4, %v965_v42, %v989_v55 }
 0x65d   : > { %v991_v57 = vsel %vm972_vm3, %v965_v42, %v990_v56 }
 0x65e   : > { %992 = vst [vmem:[%s297_s22] sm:$0xff] %v991_v57 }
 0x65f PF: > { %p17_p2 = scmp.ge.s32.totalorder %s1655_s8, 4   ;;  %s1809_s18 = smov %s1514_s19 }
 0x660   : > { %s1810_s19 = smov %s1518_s20  ;;  %s1811_s20 = smov %s1667_s11 }
 0x661   : > { %s1812_s21 = smov %s1655_s8  ;;  %19 = sbr.rel (!%p17_p2) target bundleno = 5 (0x5), region = 99 }
 0x666   :  { %1012 = vsyncpa [#allocation3], 1 }
 0x667   :  { %1014 = vsyncpa [#allocation3 + $0x1], 1 }
 0x668   :  { %1015 = vsyncpa [#allocation5], 1 }
 0x669   :  { %1016 = vsyncpa [#allocation8], 1 }

</bundles_post_ra>
